<compile_context>
chip_gen: v7x
topology: tpu7x:2x2x1
jax: 0.10.0
libtpu: 0.0.40
codegen_flags: <defaults>
</compile_context>

<pallas_src>
import functools

import jax
import jax.numpy as jnp
from jax.experimental import pallas as pl
from jax.experimental.pallas import tpu as pltpu

_LANE = 128      # vreg lane width / MXU column granularity
_SUBLANE = 8     # f32 sublane granularity


def _round_up(x, m):
    return ((x + m - 1) // m) * m


# -----------------------------------------------------------------------------
# Fused kernel: (Linear -> ReLU) x hidden_layers -> Linear -> softmax(dim=1)
# -----------------------------------------------------------------------------
def _fcnn_kernel(*refs, num_hidden_layers):
    x_ref = refs[0]
    out_ref = refs[-1]
    wb = refs[1:-1]                       # [W0, b0, W1, b1, ..., W_out, b_out]

    h = x_ref[...]                        # (tile_n, R) bf16
    for i in range(num_hidden_layers):    # static unroll (hidden_layers small)
        w = wb[2 * i][...]                # (n_in_pad, H_pad) bf16
        b = wb[2 * i + 1][...]            # (1, H_pad)        f32
        a = jnp.dot(h, w, preferred_element_type=jnp.float32) + b
        h = jnp.maximum(a, 0.0).astype(jnp.bfloat16)

    w_out = wb[2 * num_hidden_layers][...]       # (H_pad, K_pad) bf16
    b_out = wb[2 * num_hidden_layers + 1][...]   # (1, K_pad)     f32 (-1e30 pad)
    logits = jnp.dot(h, w_out, preferred_element_type=jnp.float32) + b_out

    # Numerically-stable softmax over the last dim.  Padded lanes carry
    # logit ~= -1e30 -> exp underflows to exactly 0, so they do not perturb
    # the denominator.  Exact divide keeps row sums == 1 to f32 precision.
    logits = logits - jnp.max(logits, axis=-1, keepdims=True)
    e = jnp.exp(logits)
    out_ref[...] = e / jnp.sum(e, axis=-1, keepdims=True)


# -----------------------------------------------------------------------------
# Wrapper
# -----------------------------------------------------------------------------
def fcnn_forward(x, params, *, tile_n=None):
    """x: (N, R) -> probs: (N, K). params = {"Ws": [W_i..., W_out], "bs": [...]}"""
    Ws, bs = params["Ws"], params["bs"]
    num_hidden_layers = len(Ws) - 1
    N, R = x.shape
    K = Ws[-1].shape[1]
    K_pad = _round_up(K, _LANE)

    # ---- batch tiling: big tiles, but >= 2 grid steps when N allows it
    #      (v7x megacore), and no ragged last tile (pad N instead). ----
    if tile_n is None:
        tile_n = max(_SUBLANE, min(4096, _round_up(pl.cdiv(N, 2), _SUBLANE)))
    N_pad = _round_up(N, tile_n)
    grid = (N_pad // tile_n,)

    # ---- input: pad batch with zero rows, bf16 operand for the MXU ----
    xp = x.astype(jnp.float32)
    if N_pad != N:
        xp = jnp.pad(xp, ((0, N_pad - N), (0, 0)))
    xp = xp.astype(jnp.bfloat16)

    # ---- weights / biases: pad feature dims to 128, bf16 W, f32 b ----
    flat_wb = []
    in_specs = [pl.BlockSpec((tile_n, R), lambda i: (i, 0))]
    n_in_pad = R
    for li, (W, b) in enumerate(zip(Ws, bs)):
        n_in, n_out = W.shape
        is_last = li == num_hidden_layers
        n_out_pad = K_pad if is_last else _round_up(n_out, _LANE)

        Wp = jnp.zeros((n_in_pad, n_out_pad), jnp.float32)
        Wp = Wp.at[:n_in, :n_out].set(W.astype(jnp.float32))
        if is_last:
            # Padded output lanes get a huge negative bias -> softmax weight 0.
            bp = jnp.full((n_out_pad,), -1e30, jnp.float32)
        else:
            # Padded hidden lanes: zero bias -> ReLU(0) = 0 (exact numerics).
            bp = jnp.zeros((n_out_pad,), jnp.float32)
        bp = bp.at[:n_out].set(b.astype(jnp.float32))

        flat_wb += [Wp.astype(jnp.bfloat16), bp.reshape(1, -1)]
        # Constant block index => weights/biases stay resident in VMEM.
        in_specs += [
            pl.BlockSpec((n_in_pad, n_out_pad), lambda i: (0, 0)),
            pl.BlockSpec((1, n_out_pad), lambda i: (0, 0)),
        ]
        n_in_pad = n_out_pad

    out_spec = pl.BlockSpec((tile_n, K_pad), lambda i: (i, 0))

    # ---- advisory cost estimate ----
    flops = 0
    for Wp in flat_wb[::2]:
        flops += 2 * N_pad * Wp.shape[0] * Wp.shape[1]
    w_bytes = sum(int(a.size) * a.dtype.itemsize for a in flat_wb)
    bytes_accessed = int(xp.size) * 2 + w_bytes + N_pad * K_pad * 4

    # ---- explicit VMEM budget: double-buffered x/out tiles + resident params.
    #      Keep it within v7x's 64 MiB physical VMEM. ----
    vmem_need = (2 * (tile_n * R * 2 + tile_n * K_pad * 4)
                 + 2 * w_bytes
                 + (2 << 20))                       # headroom
    vmem_limit = int(min(64 << 20, max(vmem_need, 32 << 20)))

    kernel = functools.partial(_fcnn_kernel, num_hidden_layers=num_hidden_layers)
    probs_pad = pl.pallas_call(
        kernel,
        out_shape=jax.ShapeDtypeStruct((N_pad, K_pad), jnp.float32),
        grid=grid,
        in_specs=in_specs,
        out_specs=out_spec,
        compiler_params=pltpu.CompilerParams(
            dimension_semantics=("parallel",),
            vmem_limit_bytes=vmem_limit),
        cost_estimate=pl.CostEstimate(
            flops=flops,
            transcendentals=N_pad * K_pad,
            bytes_accessed=int(bytes_accessed)),
    )(xp, *flat_wb)

    return probs_pad[:N, :K]


# -----------------------------------------------------------------------------
# Pure-JAX reference (mirrors the PyTorch FCNN.forward exactly, f32)
# -----------------------------------------------------------------------------
def _reference(x, params):
    h = x.astype(jnp.float32)
    Ws, bs = params["Ws"], params["bs"]
    for W, b in zip(Ws[:-1], bs[:-1]):
        h = jnp.maximum(h @ W + b, 0.0)
    logits = h @ Ws[-1] + bs[-1]
    return jax.nn.softmax(logits, axis=1)


if __name__ == "__main__":
    # Small shapes consistent with FCNN(R, K, hidden_units, hidden_layers); x is (N, R).
    N = 64
    R = 32
    K = 8
    hidden_units = 64
    hidden_layers = 2

    key = jax.random.PRNGKey(0)
    keys = jax.random.split(key, 2 * (hidden_layers + 1) + 1)
    k_x, wb_keys = keys[0], keys[1:]

    # Deterministic torch.nn.Linear-style uniform init (bound = 1/sqrt(fan_in)).
    Ws, bs = [], []
    n_in = R
    dims = [hidden_units] * hidden_layers + [K]
    for li, n_out in enumerate(dims):
        lim = 1.0 / jnp.sqrt(float(n_in))
        Ws.append(jax.random.uniform(wb_keys[2 * li], (n_in, n_out),
                                     jnp.float32, -lim, lim))
        bs.append(jax.random.uniform(wb_keys[2 * li + 1], (n_out,),
                                     jnp.float32, -lim, lim))
        n_in = n_out
    params = {"Ws": Ws, "bs": bs}

    x = jax.random.normal(k_x, (N, R), jnp.float32)

    probs = fcnn_forward(x, params)
    jax.block_until_ready(probs)

    probs_ref = _reference(x, params)
    assert probs.shape == (N, K)
    # bf16 matmul operands -> slightly relaxed tolerance vs the f32 reference.
    assert jnp.allclose(probs, probs_ref, rtol=5e-2, atol=2e-2)
    # Exact softmax divide -> rows sum to 1 to f32 precision.
    assert jnp.allclose(jnp.sum(probs, axis=1), jnp.ones((N,)), atol=1e-3)

    print("KERNEL_OK")
</pallas_src>

<mosaic_0001>
module attributes {stable_mosaic.version = 11 : i64} {
  func.func @_fcnn_kernel(%arg0: i32, %arg1: memref<32x32xbf16, #tpu.memory_space<vmem>>, %arg2: memref<32x128xbf16, #tpu.memory_space<vmem>>, %arg3: memref<1x128xf32, #tpu.memory_space<vmem>>, %arg4: memref<128x128xbf16, #tpu.memory_space<vmem>>, %arg5: memref<1x128xf32, #tpu.memory_space<vmem>>, %arg6: memref<128x128xbf16, #tpu.memory_space<vmem>>, %arg7: memref<1x128xf32, #tpu.memory_space<vmem>>, %arg8: memref<32x128xf32, #tpu.memory_space<vmem>>) attributes {dimension_semantics = [#tpu.dimension_semantics<parallel>], iteration_bounds = array<i64: 2>, scalar_prefetch = 0 : i64, scratch_operands = 0 : i64, tpu.core_type = #tpu.core_type<tc>, window_params = [{transform_indices = @transform_0, window_bounds = array<i64: 32, 32>}, {pipeline_mode = #tpu.pipeline_mode<synchronous>, transform_indices = @transform_1, window_bounds = array<i64: 32, 128>}, {pipeline_mode = #tpu.pipeline_mode<synchronous>, transform_indices = @transform_2, window_bounds = array<i64: 1, 128>}, {pipeline_mode = #tpu.pipeline_mode<synchronous>, transform_indices = @transform_3, window_bounds = array<i64: 128, 128>}, {pipeline_mode = #tpu.pipeline_mode<synchronous>, transform_indices = @transform_4, window_bounds = array<i64: 1, 128>}, {pipeline_mode = #tpu.pipeline_mode<synchronous>, transform_indices = @transform_5, window_bounds = array<i64: 128, 128>}, {pipeline_mode = #tpu.pipeline_mode<synchronous>, transform_indices = @transform_6, window_bounds = array<i64: 1, 128>}, {transform_indices = @transform_7, window_bounds = array<i64: 32, 128>}]} {
    %c0 = arith.constant 0 : index
    %c0_0 = arith.constant 0 : index
    %0 = vector.load %arg1[%c0, %c0_0] : memref<32x32xbf16, #tpu.memory_space<vmem>>, vector<32x32xbf16>
    %c0_1 = arith.constant 0 : index
    %c0_2 = arith.constant 0 : index
    %1 = vector.load %arg2[%c0_1, %c0_2] : memref<32x128xbf16, #tpu.memory_space<vmem>>, vector<32x128xbf16>
    %c0_3 = arith.constant 0 : index
    %c0_4 = arith.constant 0 : index
    %2 = vector.load %arg3[%c0_3, %c0_4] : memref<1x128xf32, #tpu.memory_space<vmem>>, vector<1x128xf32>
    %cst = arith.constant dense<0.000000e+00> : vector<32x128xf32>
    %3 = tpu.matmul %0, %1, %cst {dimension_numbers = #tpu.dot_dimension_numbers<[1], [0], [0], [1], [0, 0, 1, 1], [], []>} : vector<32x32xbf16>, vector<32x128xbf16>, vector<32x128xf32> -> vector<32x128xf32>
    %4 = vector.broadcast %2 : vector<1x128xf32> to vector<32x128xf32>
    %5 = arith.addf %3, %4 : vector<32x128xf32>
    %cst_5 = arith.constant 0.000000e+00 : f32
    %6 = vector.broadcast %cst_5 : f32 to vector<32x128xf32>
    %7 = arith.maximumf %5, %6 : vector<32x128xf32>
    %8 = arith.truncf %7 : vector<32x128xf32> to vector<32x128xbf16>
    %c0_6 = arith.constant 0 : index
    %c0_7 = arith.constant 0 : index
    %9 = vector.load %arg4[%c0_6, %c0_7] : memref<128x128xbf16, #tpu.memory_space<vmem>>, vector<128x128xbf16>
    %c0_8 = arith.constant 0 : index
    %c0_9 = arith.constant 0 : index
    %10 = vector.load %arg5[%c0_8, %c0_9] : memref<1x128xf32, #tpu.memory_space<vmem>>, vector<1x128xf32>
    %cst_10 = arith.constant dense<0.000000e+00> : vector<32x128xf32>
    %11 = tpu.matmul %8, %9, %cst_10 {dimension_numbers = #tpu.dot_dimension_numbers<[1], [0], [0], [1], [0, 0, 1, 1], [], []>} : vector<32x128xbf16>, vector<128x128xbf16>, vector<32x128xf32> -> vector<32x128xf32>
    %12 = vector.broadcast %10 : vector<1x128xf32> to vector<32x128xf32>
    %13 = arith.addf %11, %12 : vector<32x128xf32>
    %cst_11 = arith.constant 0.000000e+00 : f32
    %14 = vector.broadcast %cst_11 : f32 to vector<32x128xf32>
    %15 = arith.maximumf %13, %14 : vector<32x128xf32>
    %16 = arith.truncf %15 : vector<32x128xf32> to vector<32x128xbf16>
    %c0_12 = arith.constant 0 : index
    %c0_13 = arith.constant 0 : index
    %17 = vector.load %arg6[%c0_12, %c0_13] : memref<128x128xbf16, #tpu.memory_space<vmem>>, vector<128x128xbf16>
    %c0_14 = arith.constant 0 : index
    %c0_15 = arith.constant 0 : index
    %18 = vector.load %arg7[%c0_14, %c0_15] : memref<1x128xf32, #tpu.memory_space<vmem>>, vector<1x128xf32>
    %cst_16 = arith.constant dense<0.000000e+00> : vector<32x128xf32>
    %19 = tpu.matmul %16, %17, %cst_16 {dimension_numbers = #tpu.dot_dimension_numbers<[1], [0], [0], [1], [0, 0, 1, 1], [], []>} : vector<32x128xbf16>, vector<128x128xbf16>, vector<32x128xf32> -> vector<32x128xf32>
    %20 = vector.broadcast %18 : vector<1x128xf32> to vector<32x128xf32>
    %21 = arith.addf %19, %20 : vector<32x128xf32>
    %cst_17 = arith.constant dense<0xFF800000> : vector<32xf32>
    %22 = vector.multi_reduction <maximumf>, %21, %cst_17 [1] : vector<32x128xf32> to vector<32xf32>
    %23 = vector.shape_cast %22 : vector<32xf32> to vector<32x1xf32>
    %24 = vector.broadcast %23 : vector<32x1xf32> to vector<32x128xf32>
    %25 = arith.subf %21, %24 : vector<32x128xf32>
    %26 = math.exp %25 : vector<32x128xf32>
    %cst_18 = arith.constant dense<0.000000e+00> : vector<32xf32>
    %27 = vector.multi_reduction <add>, %26, %cst_18 [1] : vector<32x128xf32> to vector<32xf32>
    %28 = vector.shape_cast %27 : vector<32xf32> to vector<32x1xf32>
    %29 = vector.broadcast %28 : vector<32x1xf32> to vector<32x128xf32>
    %30 = arith.divf %26, %29 : vector<32x128xf32>
    %c0_19 = arith.constant 0 : index
    %c0_20 = arith.constant 0 : index
    %31 = vector.load %arg8[%c0_19, %c0_20] : memref<32x128xf32, #tpu.memory_space<vmem>>, vector<32x128xf32>
    tpu.vector_store %arg8[%c0_19, %c0_20], %30 {strides = array<i32>} : memref<32x128xf32, #tpu.memory_space<vmem>>, vector<32x128xf32>,
    return
  }
  func.func @transform_0(%arg0: i32) -> (i32, i32) {
    %c0_i32 = arith.constant 0 : i32
    %c0_i32_0 = arith.constant 0 : i32
    return %arg0, %c0_i32 : i32, i32
  }
  func.func @transform_1(%arg0: i32) -> (i32, i32) {
    %c0_i32 = arith.constant 0 : i32
    %c0_i32_0 = arith.constant 0 : i32
    %c0_i32_1 = arith.constant 0 : i32
    return %c0_i32, %c0_i32_0 : i32, i32
  }
  func.func @transform_2(%arg0: i32) -> (i32, i32) {
    %c0_i32 = arith.constant 0 : i32
    %c0_i32_0 = arith.constant 0 : i32
    %c0_i32_1 = arith.constant 0 : i32
    return %c0_i32, %c0_i32_0 : i32, i32
  }
  func.func @transform_3(%arg0: i32) -> (i32, i32) {
    %c0_i32 = arith.constant 0 : i32
    %c0_i32_0 = arith.constant 0 : i32
    %c0_i32_1 = arith.constant 0 : i32
    return %c0_i32, %c0_i32_0 : i32, i32
  }
  func.func @transform_4(%arg0: i32) -> (i32, i32) {
    %c0_i32 = arith.constant 0 : i32
    %c0_i32_0 = arith.constant 0 : i32
    %c0_i32_1 = arith.constant 0 : i32
    return %c0_i32, %c0_i32_0 : i32, i32
  }
  func.func @transform_5(%arg0: i32) -> (i32, i32) {
    %c0_i32 = arith.constant 0 : i32
    %c0_i32_0 = arith.constant 0 : i32
    %c0_i32_1 = arith.constant 0 : i32
    return %c0_i32, %c0_i32_0 : i32, i32
  }
  func.func @transform_6(%arg0: i32) -> (i32, i32) {
    %c0_i32 = arith.constant 0 : i32
    %c0_i32_0 = arith.constant 0 : i32
    %c0_i32_1 = arith.constant 0 : i32
    return %c0_i32, %c0_i32_0 : i32, i32
  }
  func.func @transform_7(%arg0: i32) -> (i32, i32) {
    %c0_i32 = arith.constant 0 : i32
    %c0_i32_0 = arith.constant 0 : i32
    return %arg0, %c0_i32 : i32, i32
  }
}

</mosaic_0001>

<bundles_post_ra>
// kernel: tpu_custom_call.1
= control target key start
LH: loop header
LB: loop body
LE: loop exit
PB: predicated region body
PF: predicated region fallthrough
CT: control target
= control target key end

     0   :  { %12 = vsyncpa [#allocation3], 0  ;;  %s1390_s0 = inlined_call_operand.vmem [shape: bf16[64,32], index: 0, kind: input, shape index: {}]   ;;  %s1391_s1 = inlined_call_operand.hbm [shape: bf16[32,128], index: 1, kind: input, shape index: {}]   ;;  %s1392_s2 = inlined_call_operand.vmem [shape: f32[1,128], index: 2, kind: input, shape index: {}]   ;;  %s1393_s3 = inlined_call_operand.hbm [shape: bf16[128,128], index: 3, kind: input, shape index: {}]   ;;  %s1394_s4 = inlined_call_operand.vmem [shape: f32[1,128], index: 4, kind: input, shape index: {}]   ;;  %s1395_s5 = inlined_call_operand.vmem [shape: bf16[128,128], index: 5, kind: input, shape index: {}]   ;;  %s1396_s6 = inlined_call_operand.vmem [shape: f32[1,128], index: 6, kind: input, shape index: {}]   ;;  %s1397_s7 = inlined_call_operand.hbm [shape: f32[64,128], index: 7, kind: output, shape index: {}]  }
   0x1   :  { %13 = vsyncpa [#allocation6], 0 }
   0x2   :  { %14 = vsyncpa [#allocation4], 0 }
   0x3   :  { %16 = vsyncpa [#allocation4 + $0x1], 0  ;;  %s1183_s24 = smov 0   ;;  %s1185_s25 = smov 0  }
   0x4   :  { %s1187_s26 = smov 0   ;;  %s1189_s27 = smov 0  }
   0x5 LB: > { %s1204_s28 = sadd.s32 4294967295, %s1134_s27   ;;  %s794_s29 = sadd.s32 4294967294, %s1134_s27   ;;  %s1134_s27 = sphi %s1189_s27, %s1417_s27   ;;  %s1130_s26 = sphi %s1187_s26, %s1416_s26   ;;  %s1126_s25 = sphi %s1185_s25, %s1415_s25   ;;  %s1122_s24 = sphi %s1183_s24, %s1414_s24  }
   0x6   : > { %s1208_s30 = sadd.s32 1, %s1134_s27   ;;  %s181_s8 = sadd.s32 1, %s1130_s26 }
   0x7   : > { %s178_s9 = ssub.s32 %s1134_s27, %s1208_s30  ;;  %p191_p0 = scmp.ne.s32.totalorder %s1130_s26, %s1126_s25 }
   0x8   : > { %p179_p1 = scmp.eq.s32.totalorder %s178_s9, 0  ;;  %p192_p2 = scmp.eq.s32.totalorder %s1204_s28, 1 }
   0x9   : > { %p197_p3 = scmp.ne.s32.totalorder %s1126_s25, %s1122_s24  ;;  %p198_p4 = scmp.eq.s32.totalorder %s794_s29, 1 }
   0xa   : > { %s1219_s10 = scalar_select %p179_p1, %s1130_s26, %s181_s8  }
   0xb   : > { %p1221_p5 = por %p192_p2, %p191_p0  ;;  %p1225_p6 = por %p198_p4, %p197_p3 }
   0xc   : > { %1401 = sst [smem:[#allocation11_spill]] %s1219_s10  ;;  %p795_p7 = scmp.ge.s32.totalorder %s1134_s27, 1 }
   0xd   : > { %s1402_s11 = scalar_select %p1221_p5, 1, 0 }
   0xe   : > { %s1403_s12 = scalar_select %p1225_p6, 1, 0 }
   0xf   : > { %p205_p8 = scmp.lt.s32.totalorder %s1134_s27, 3  ;;  %p1398_p9 = scmp.eq.s32.totalorder %s1204_s28, 0 }
  0x10   : > { %s1136_s14 = smov [#allocation2]   ;;  %s1137_s17 = smov [#allocation5]  }
  0x11   : > { %p1232_p10 = pnand %p795_p7, %p205_p8  ;;  %s217_s15 = sshll.u32 %s1136_s14, 4  ;;  %s218_s15 = int_to_ptr.vmem [resolvable:$true] %s217_s15 }
  0x12   : > { %s233_s18 = sshll.u32 %s1137_s17, 4  ;;  %s1008_s21 = scalar_lea.hbm %s1391_s1, 256  ;;  %s1244_s18 = int_to_ptr.vmem [resolvable:$true] %s233_s18 }
  0x13   : > { %s1404_s13 = scalar_select %p1232_p10, 1, 0 }
  0x14   : > { %p918_p11 = pneg %p1232_p10  ;;  %p1009_p13 = scmp.ne.s32.totalorder %s1391_s1, %s1008_s21 }
  0x15   : > { %p1015_p3 = scmp.lt.u32.totalorder %s1008_s21, %s1391_s1 }
  0x16   : > { %p1240_p12 = pnand %p1398_p9, %p918_p11 }
  0x18   : > { %p1010_p0 = pneg %p1240_p12 }
  0x1a   : > { %p1011_p1 = pnand %p1010_p0, %p1009_p13 }
  0x1c   : > { %p1012_p2 = pneg %p1011_p1 }
  0x1e   : > { %p1017_p4 = pnand %p1015_p3, %p1012_p2 }
  0x20   : > { %1020 = shalt.err (!%p1017_p4)
}
  0x21   : > { %s1021_s9 = scalar_lea.vmem %s218_s15, 256  ;;  %p1029_p9 = scmp.lt.s32.totalorder %s218_s15, %s218_s15 }
  0x22   : > { %p1022_p7 = scmp.ne.s32.totalorder %s218_s15, %s1021_s9  ;;  %p1030_p6 = scmp.lt.s32.totalorder %s1021_s9, %s1021_s9 }
  0x24   : > { %p1024_p8 = pnand %p1022_p7, %p1010_p0  ;;  %p1031_p5 = por %p1030_p6, %p1029_p9 }
  0x26   : > { %p1025_p11 = pneg %p1024_p8 }
  0x28   : > { %p1032_p10 = pnand %p1031_p5, %p1025_p11 }
  0x2a   : > { %1035 = shalt.err (!%p1032_p10)
}
  0x2b   : > { %s1138_s14 = smov 64   ;;  %s1139_s17 = smov 4  }
  0x2c   : > { %921 = dma.hbm_to_vmem [thread:$0]  (!%p1240_p12), %s1391_s1, 256, %s218_s15, [#allocation3], %s1138_s14, %s1138_s14, %s1139_s17  }
  0x2d   : > { %s1036_s23 = scalar_lea.hbm %s1393_s3, 1024 }
  0x2e   : > { %p1037_p13 = scmp.ne.s32.totalorder %s1393_s3, %s1036_s23  ;;  %p1043_p9 = scmp.lt.u32.totalorder %s1036_s23, %s1393_s3 }
  0x30   : > { %p1039_p5 = pnand %p1037_p13, %p1010_p0 }
  0x32   : > { %p1040_p6 = pneg %p1039_p5 }
  0x34   : > { %p1045_p10 = pnand %p1043_p9, %p1040_p6 }
  0x36   : > { %1048 = shalt.err (!%p1045_p10)
}
  0x37   : > { %s1049_s15 = scalar_lea.vmem %s1244_s18, 1024  ;;  %p1057_p4 = scmp.lt.s32.totalorder %s1244_s18, %s1244_s18 }
  0x38   : > { %p1050_p1 = scmp.ne.s32.totalorder %s1244_s18, %s1049_s15  ;;  %p1058_p7 = scmp.lt.s32.totalorder %s1049_s15, %s1049_s15 }
  0x3a   : > { %p1052_p2 = pnand %p1050_p1, %p1010_p0  ;;  %p1059_p8 = por %p1058_p7, %p1057_p4 }
  0x3c   : > { %p1053_p3 = pneg %p1052_p2 }
  0x3e   : > { %p1060_p11 = pnand %p1059_p8, %p1053_p3 }
  0x40   : > { %1063 = shalt.err (!%p1060_p11)
}
  0x41   : > { %924 = dma.hbm_to_vmem [thread:$0]  (!%p1240_p12), %s1393_s3, 1024, %s1244_s18, [#allocation6], %s1138_s14, %s1138_s14, %s1139_s17  }
  0x42   : > { %p1406_p13 = scmp.ne.s32.totalorder %s1404_s13, 0 }
  0x43   : > { %p1407_p5 = scmp.eq.s32.totalorder (!%p1406_p13), %s1204_s28, 0 }
  0x44   : > { %267 = sbr.rel (%p1406_p13) target bundleno = 1083 (0x43b), region = 48 }
  0x4b   : > { %1109 = dma.done.wait (%p1407_p5), [#allocation3], 256   ;;  %p1408_p0 = pmov %p1407_p5 }
  0x4d   : > { %1111 = vsyncadd (%p1408_p0), [#allocation3], 4294967040  ;;  %p1409_p6 = pmov %p1408_p0 }
  0x4e   : > { %p1410_p9 = pmov %p1408_p0 }
  0x4f   : > { %1113 = dma.done.wait (%p1409_p6), [#allocation6], 1024  }
  0x50   : > { %1115 = vsyncadd (%p1410_p9), [#allocation6], 4294966272  ;;  %s803_s16 = sshll.u32 %s1204_s28, 2  ;;  %v972_v0 = vld [vmem:[#allocation2] sm:$0xff]   ;;  %v973_v1 = vld [vmem:[#allocation2 + $0x8] sm:$0xff]   ;;  %vm348_vm0 = vcmask 261120  }
  0x51   : > { %p304_p10 = scmp.lt.s32.totalorder %s803_s16, 7  ;;  %860 = vmatprep.subr.bf16.mxu0 %v972_v0  ;;  %v976_v3 = vld [vmem:[#allocation5] sm:$0xff]   ;;  %v977_v4 = vld [vmem:[#allocation5 + $0x8] sm:$0xff]   ;;  %v978_v6 = vld [vmem:[#allocation5 + $0x10] sm:$0xff]   ;;  %s300_s15 = sand.u32 1, %s1126_s25  }
  0x52   : > { %861 = vmatpush3.bf16.msra.mxu0 %v972_v0  ;;  %868 = vmatprep.subr.bf16.mxu1 %v976_v3  ;;  %v979_v7 = vld [vmem:[#allocation5 + $0x18] sm:$0xff]   ;;  %v980_v8 = vld [vmem:[#allocation5 + $0x20] sm:$0xff]   ;;  %v981_v9 = vld [vmem:[#allocation5 + $0x28] sm:$0xff]   ;;  %s802_s10 = sshll.u32 %s300_s15, 5  ;;  %s1349_s20 = scalar_lea.sflag [#allocation4], %s300_s15 }
  0x53   : > { %s1419_s16 = smov (!%p304_p10, %s803_s16), 7  ;;  %862 = vmatprep.subr.bf16.mxu0 %v973_v1  ;;  %869 = vmatpush3.bf16.msra.mxu1 %v976_v3  ;;  %v982_v10 = vld [vmem:[#allocation5 + $0x30] sm:$0xff]   ;;  %v983_v11 = vld [vmem:[#allocation5 + $0x38] sm:$0xff]   ;;  %v986_v14 = vld [vmem:[%s1395_s5 + $0x10] sm:$0xff]   ;;  %s302_s19 = scalar_lea.vmem [#allocation7], %s802_s10 }
  0x54   : > { %s804_s18 = sshll.u32 %s1419_s16, 2  ;;  %870 = vmatprep.subr.bf16.mxu1 %v977_v4  ;;  %v984_v12 = vld [vmem:[%s1395_s5] sm:$0xff]   ;;  %v985_v13 = vld [vmem:[%s1395_s5 + $0x8] sm:$0xff]   ;;  %v987_v15 = vld [vmem:[%s1395_s5 + $0x18] sm:$0xff]   ;;  %s835_s16 = sshll.u32 %s1204_s28, 9 }
  0x55   : > { %s307_s17 = scalar_lea.vmem %s1390_s0, %s804_s18  ;;  %v988_v16 = vld [vmem:[%s1395_s5 + $0x20] sm:$0xff]   ;;  %v989_v17 = vld [vmem:[%s1395_s5 + $0x28] sm:$0xff]   ;;  %v990_v33 = vld [vmem:[%s1395_s5 + $0x30] sm:$0xff]   ;;  %s710_s18 = sshll.u32 %s302_s19, 4  ;;  %s1347_s18 = int_to_ptr.vmem [resolvable:$true] %s710_s18 }
  0x56   : > { %v974_v2 = vld [vmem:[%s307_s17] sm:$0xff]   ;;  %v975_v5 = vld [vmem:[%s307_s17 + $0x8] sm:$0xff]   ;;  %863 = vmatpush3.bf16.msra.mxu0 %v973_v1  ;;  %v991_v34 = vld [vmem:[%s1395_s5 + $0x38] sm:$0xff]   ;;  %s1345_s17 = scalar_lea.hbm %s1397_s7, %s835_s16  ;;  %s1064_s28 = scalar_lea.vmem %s1347_s18, 512 }
  0x57   : > { %864 = vmatprep.mubr.msk.bf16.mxu0 %vm348_vm0, %v974_v2  ;;  %871 = vmatpush3.bf16.msra.mxu1 %v977_v4  ;;  %v805_v18 = vld [vmem:[%s1392_s2] ss:$0 sm:$0xff]  ;;  %p1065_p12 = scmp.ne.s32.totalorder %s1347_s18, %s1064_s28  ;;  %p1411_p1 = scmp.ne.s32.totalorder %s1402_s11, 0 }
  0x58   : > { %872 = vmatprep.subr.bf16.mxu1 %v978_v6  ;;  %888 = vmatprep.subr.bf16.mxu0 %v984_v12  ;;  %v812_v35 = vld [vmem:[%s1394_s4] ss:$0 sm:$0xff]  ;;  %s1140_s21 = smov [#allocation7]  }
  0x59   : > { %865 = vmatmul.mubr.msk.bf16.vlgmr.msra.gmra.mrb[0].mxu0 %vm348_vm0, %v975_v5  ;;  %v821_v50 = vld [vmem:[%s1396_s6] ss:$0 sm:$0xff]  ;;  %p1066_p2 = pnand %p1065_p12, %p1411_p1  ;;  %s1068_s22 = sshll.u32 %s1140_s21, 4  ;;  %s1069_s22 = int_to_ptr.vmem [resolvable:$false] %s1068_s22 }
  0x5a   : > { %889 = vmatpush3.bf16.msra.mxu0 %v984_v12  ;;  %s1070_s23 = scalar_lea.vmem %s1069_s22, 1024  ;;  %p1071_p4 = scmp.lt.s32.totalorder %s1347_s18, %s1069_s22 }
  0x5b   : > { %873 = vmatpush3.bf16.msra.mxu1 %v978_v6  ;;  %890 = vmatprep.subr.bf16.mxu0 %v985_v13  ;;  %p1067_p3 = pneg %p1066_p2  ;;  %p1072_p7 = scmp.lt.s32.totalorder %s1070_s23, %s1064_s28 }
  0x5c   : > { %874 = vmatprep.subr.bf16.mxu1 %v979_v7 }
  0x5d   : > { %p1073_p8 = por %p1072_p7, %p1071_p4 }
  0x5e   : > { %891 = vmatpush3.bf16.msra.mxu0 %v985_v13 }
  0x5f   : > { %875 = vmatpush3.bf16.msra.mxu1 %v979_v7  ;;  %892 = vmatprep.subr.bf16.mxu0 %v986_v14  ;;  %p1074_p11 = pnand %p1073_p8, %p1067_p3 }
  0x60   : > { %876 = vmatprep.subr.bf16.mxu1 %v980_v8 }
  0x62   : > { %893 = vmatpush3.bf16.msra.mxu0 %v986_v14 }
  0x63   : > { %877 = vmatpush3.bf16.msra.mxu1 %v980_v8  ;;  %894 = vmatprep.subr.bf16.mxu0 %v987_v15 }
  0x64   : > { %878 = vmatprep.subr.bf16.mxu1 %v981_v9 }
  0x66   : > { %895 = vmatpush3.bf16.msra.mxu0 %v987_v15 }
  0x67   : > { %879 = vmatpush3.bf16.msra.mxu1 %v981_v9  ;;  %896 = vmatprep.subr.bf16.mxu0 %v988_v16 }
  0x68   : > { %880 = vmatprep.subr.bf16.mxu1 %v982_v10 }
  0x6a   : > { %897 = vmatpush3.bf16.msra.mxu0 %v988_v16 }
  0x6b   : > { %881 = vmatpush3.bf16.msra.mxu1 %v982_v10  ;;  %898 = vmatprep.subr.bf16.mxu0 %v989_v17 }
  0x6c   : > { %882 = vmatprep.subr.bf16.mxu1 %v983_v11 }
  0x6e   : > { %899 = vmatpush3.bf16.msra.mxu0 %v989_v17 }
  0x6f   : > { %883 = vmatpush3.bf16.msra.mxu1 %v983_v11  ;;  %900 = vmatprep.subr.bf16.mxu0 %v990_v33 }
  0x72   : > { %901 = vmatpush3.bf16.msra.mxu0 %v990_v33 }
  0x73   : > { %902 = vmatprep.subr.bf16.mxu0 %v991_v34 }
  0x76   : > { %903 = vmatpush3.bf16.msra.mxu0 %v991_v34 }
 0x12c   : > { %v866_v19 = vpop.f32.mrb[0].mxu0 }
 0x12d   : > { %v398_v20 = vadd.f32 %v866_v19, %v805_v18  ;;  %v389_v21 = vpop.f32.mrb[1].mxu0 }
 0x12e   : > { %v390_v22 = vadd.f32 %v805_v18, %v389_v21  ;;  %v867_v23 = vpop.f32.mrb[2].mxu0 }
 0x12f   : > { %v401_v24 = vadd.f32 %v867_v23, %v805_v18  ;;  %v392_v25 = vpop.f32.mrb[3].mxu0  ;;  %v406_v27 = vmax.f32 %v398_v20, 0.0 }
 0x130   : > { %v393_v26 = vadd.f32 %v805_v18, %v392_v25  ;;  %v404_v29 = vmax.f32 %v390_v22, 0.0 }
 0x131   : > { %v407_v28 = vmax.f32 %v401_v24, 0.0 }
 0x132   : > { %v405_v30 = vmax.f32 %v393_v26, 0.0 }
 0x133   : > { %v409_v31 = vpack.c.bf16 %v407_v28, %v406_v27 }
 0x134   : > { %v408_v32 = vpack.c.bf16 %v405_v30, %v404_v29 }
 0x136   : > { %884 = vmatprep.mubr.bf16.mxu1 %v408_v32 }
 0x137   : > { %885 = vmatmul.mubr.bf16.vlgmr.msra.gmra.mrb[0].mxu1 %v409_v31 }
 0x20a   : > { %v886_v36 = vpop.f32.mrb[0].mxu1 }
 0x20b   : > { %v524_v37 = vadd.f32 %v886_v36, %v812_v35  ;;  %v515_v38 = vpop.f32.mrb[1].mxu1 }
 0x20c   : > { %v516_v39 = vadd.f32 %v812_v35, %v515_v38  ;;  %v887_v40 = vpop.f32.mrb[2].mxu1 }
 0x20d   : > { %v527_v41 = vadd.f32 %v887_v40, %v812_v35  ;;  %v518_v42 = vpop.f32.mrb[3].mxu1  ;;  %v532_v44 = vmax.f32 %v524_v37, 0.0 }
 0x20e   : > { %v519_v43 = vadd.f32 %v812_v35, %v518_v42  ;;  %v530_v46 = vmax.f32 %v516_v39, 0.0 }
 0x20f   : > { %v533_v45 = vmax.f32 %v527_v41, 0.0 }
 0x210   : > { %v531_v47 = vmax.f32 %v519_v43, 0.0 }
 0x211   : > { %v535_v48 = vpack.c.bf16 %v533_v45, %v532_v44 }
 0x212   : > { %v534_v49 = vpack.c.bf16 %v531_v47, %v530_v46 }
 0x214   : > { %904 = vmatprep.mubr.bf16.mxu0 %v534_v49 }
 0x215   : > { %905 = vmatmul.mubr.bf16.vlgmr.msra.gmra.mrb[4].mxu0 %v535_v48 }
 0x2e8   : > { %v906_v51 = vpop.f32.mrb[4].mxu0 }
 0x2e9   : > { %v650_v52 = vadd.f32 %v906_v51, %v821_v50  ;;  %v641_v53 = vpop.f32.mrb[5].mxu0 }
 0x2ea   : > { %v642_v54 = vadd.f32 %v821_v50, %v641_v53  ;;  %v907_v55 = vpop.f32.mrb[6].mxu0 }
 0x2eb   : > { %660 = vmax.xlane.f32.xlu1 %v650_v52  ;;  %v644_v56 = vpop.f32.mrb[7].mxu0  ;;  %v653_v57 = vadd.f32 %v907_v55, %v821_v50 }
 0x2ec   : > { %656 = vmax.xlane.f32.xlu0 %v642_v54  ;;  %v645_v58 = vadd.f32 %v821_v50, %v644_v56 }
 0x2ef   : > { %662 = vmax.xlane.f32.xlu1 %v653_v57 }
 0x2f0   : > { %658 = vmax.xlane.f32.xlu0 %v645_v58 }
 0x378   : > { %v661_v59 = vpop.xlane.xlu1 %660 }
 0x379   : > { %v666_v60 = vsub.f32 %v650_v52, %v661_v59  ;;  %v657_v61 = vpop.xlane.xlu0 %656 }
 0x37a   : > { %v664_v62 = vsub.f32 %v642_v54, %v657_v61 }
 0x37b   : > { %v672_v1 = vmul.f32 1.442695, %v666_v60 }
 0x37c   : > { %v668_v63 = vmul.f32 1.442695, %v664_v62  ;;  %v663_v0 = vpop.xlane.xlu1 %662 }
 0x37d   : > { %v659_v2 = vpop.xlane.xlu0 %658  ;;  %v667_v3 = vsub.f32 %v653_v57, %v663_v0 }
 0x37e   : > { %992 = vpow2.f32 %v668_v63  ;;  %v665_v4 = vsub.f32 %v645_v58, %v659_v2 }
 0x37f   : > { %994 = vpow2.f32 %v672_v1  ;;  %v674_v6 = vmul.f32 1.442695, %v667_v3 }
 0x380   : > { %v670_v5 = vmul.f32 1.442695, %v665_v4 }
 0x382   : > { %996 = vpow2.f32 %v670_v5 }
 0x383   : > { %998 = vpow2.f32 %v674_v6 }
 0x388   : > { %v993_v7 = vpop.eup %992 }
 0x389   : > { %676 = vadd.xlane.f32.xlu0 %v993_v7  ;;  %v995_v8 = vpop.eup %994 }
 0x38c   : > { %v997_v9 = vpop.eup %996 }
 0x38d   : > { %680 = vadd.xlane.f32.xlu0 %v995_v8  ;;  %678 = vadd.xlane.f32.xlu1 %v997_v9  ;;  %v999_v10 = vpop.eup %998 }
 0x391   : > { %682 = vadd.xlane.f32.xlu1 %v999_v10 }
 0x416   : > { %v677_v11 = vpop.xlane.xlu0 %676 }
 0x417   : > { %1000 = vrcp.f32 %v677_v11 }
 0x41a   : > { %v679_v12 = vpop.xlane.xlu1 %678  ;;  %v681_v13 = vpop.xlane.xlu0 %680 }
 0x41b   : > { %1002 = vrcp.f32 %v679_v12 }
 0x41c   : > { %1004 = vrcp.f32 %v681_v13 }
 0x41e   : > { %v683_v14 = vpop.xlane.xlu1 %682 }
 0x41f   : > { %1006 = vrcp.f32 %v683_v14 }
 0x421   : > { %v1001_v15 = vpop.eup %1000 }
 0x422   : > { %v685_v16 = vmul.f32 %v1001_v15, %v993_v7 }
 0x424   : > { %692 = vst [vmem:[%s302_s19] sm:$0xff] %v685_v16 }
 0x425   : > { %v1003_v17 = vpop.eup %1002 }
 0x426   : > { %v1005_v18 = vpop.eup %1004  ;;  %v687_v19 = vmul.f32 %v1003_v17, %v997_v9 }
 0x427   : > { %v689_v20 = vmul.f32 %v1005_v18, %v995_v8 }
 0x428   : > { %693 = vst [vmem:[%s302_s19 + $0x8] sm:$0xff] %v687_v19 }
 0x429   : > { %v1007_v21 = vpop.eup %1006  ;;  %694 = vst [vmem:[%s302_s19 + $0x10] sm:$0xff] %v689_v20 }
 0x42a   : > { %v691_v22 = vmul.f32 %v1007_v21, %v999_v10 }
 0x42c   : > { %695 = vst [vmem:[%s302_s19 + $0x18] sm:$0xff] %v691_v22 }
 0x42d   : > { %1077 = shalt.err (!%p1074_p11)
}
 0x42e   : > { %s1078_s29 = scalar_lea.hbm %s1345_s17, 512  ;;  %s1082_s15 = scalar_lea.hbm %s1397_s7, 1024 }
 0x42f   : > { %p1079_p13 = scmp.ne.s32.totalorder %s1345_s17, %s1078_s29  ;;  %p1083_p6 = scmp.lt.u32.totalorder %s1345_s17, %s1397_s7 }
 0x430   : > { %p1084_p9 = scmp.lt.u32.totalorder %s1082_s15, %s1078_s29  ;;  %p1086_p12 = scmp.lt.u32.totalorder %s1078_s29, %s1345_s17 }
 0x431   : > { %p1080_p5 = pnand %p1079_p13, %p1411_p1 }
 0x432   : > { %p1085_p10 = por %p1084_p9, %p1083_p6 }
 0x433   : > { %p1081_p0 = pneg %p1080_p5 }
 0x434   : > { %p1087_p2 = por %p1086_p12, %p1085_p10 }
 0x436   : > { %p1088_p3 = pnand %p1087_p2, %p1081_p0 }
 0x438   : > { %1091 = shalt.err (!%p1088_p3)
}
 0x439   : > { %s1141_s16 = smov 128   ;;  %s1142_s14 = smov 8  }
 0x43a   : > { %916 = dma.vmem_to_hbm [thread:$0]  (%p1411_p1), %s1347_s18, 512, %s1345_s17, %s1349_s20, %s1141_s16, %s1141_s16, %s1142_s14  }
 0x43b PF: > { %p933_p4 = scmp.ge.s32.totalorder %s1134_s27, 2  ;;  %s725_s13 = sand.u32 1, %s1122_s24  }
 0x43c   : > { %p1412_p7 = scmp.ne.s32.totalorder %s1403_s12, 0  ;;  %s726_s28 = scalar_lea.sflag [#allocation4], %s725_s13 }
 0x43e   : > { %p926_p8 = pnand %p933_p4, %p1412_p7 }
 0x440   : > { %1117 = dma.done.wait (!%p926_p8), %s726_s28, 512  }
 0x441   : > { %1119 = vsyncadd (!%p926_p8), %s726_s28, 4294966784  ;;  %s1413_s21 = sld [smem:[#allocation11_spill]]  ;;  %p19_p11 = scmp.ge.s32.totalorder %s1208_s30, 4  }
 0x442   : > { %s1414_s24 = smov %s1126_s25  ;;  %s1415_s25 = smov %s1130_s26 }
 0x443   : > { %s1417_s27 = smov %s1208_s30  ;;  %21 = sbr.rel (!%p19_p11) target bundleno = 5 (0x5), region = 92 }
 0x447   : > { %s1416_s26 = smov %s1413_s21 }
 0x44a   :  { %731 = vsyncpa [#allocation3], 1 }
 0x44b   :  { %733 = vsyncpa [#allocation3 + $0x1], 1 }
 0x44c   :  { %734 = vsyncpa [#allocation6], 1 }
 0x44d   :  { %735 = vsyncpa [#allocation4], 1 }
 0x44e   :  { %737 = vsyncpa [#allocation4 + $0x1], 1 }

</bundles_post_ra>
